<compile_context>
chip_gen: v7x
topology: tpu7x:2x2x1
jax: 0.10.0
libtpu: 0.0.40
codegen_flags: <defaults>
</compile_context>

<pallas_src>
from typing import NamedTuple

import jax
import jax.numpy as jnp
from jax.experimental import pallas as pl
from jax.experimental.pallas import tpu as pltpu


def _round_up(x: int, m: int) -> int:
    return (x + m - 1) // m * m


def _vmem_capacity_bytes() -> int:
    try:
        return int(pltpu.get_tpu_info().vmem_capacity_bytes)
    except Exception:
        return 64 * 1024 * 1024  # conservative: v7x per-TensorCore VMEM


class MLPParams(NamedTuple):
    w1: jax.Array            # (in_p, h_p)    compute dtype
    b1: jax.Array            # (1, h_p)       f32
    w2: jax.Array            # (h_p, out_p)   compute dtype
    b2: jax.Array            # (1, out_p)     f32
    in_features: int
    n_hidden: int
    out_features: int


def prepare_mlp_params(w1, b1, w2, b2, *, compute_dtype=jnp.bfloat16) -> MLPParams:
    """Pad weights/biases to (8,128)-aligned tiles and cast once.

    Hoisted out of the per-call path: for repeated calls the padded copies are
    reused.  Weights are stored already transposed as (in, out).  Zero padding
    is numerically neutral: padded hidden lanes give relu(0+0)=0 and padded
    output lanes are sliced off in the wrapper.
    """
    in_features, n_hidden = w1.shape
    n_hidden2, out_features = w2.shape
    assert n_hidden2 == n_hidden
    assert b1.shape == (n_hidden,) and b2.shape == (out_features,)

    in_p = _round_up(in_features, 128)
    h_p = _round_up(n_hidden, 128)
    out_p = _round_up(out_features, 128)

    w1_p = jnp.pad(w1.astype(compute_dtype),
                   ((0, in_p - in_features), (0, h_p - n_hidden)))
    w2_p = jnp.pad(w2.astype(compute_dtype),
                   ((0, h_p - n_hidden), (0, out_p - out_features)))
    # Biases stay f32: they are added to the f32 MXU accumulator.
    b1_p = jnp.pad(b1.astype(jnp.float32), (0, h_p - n_hidden)).reshape(1, h_p)
    b2_p = jnp.pad(b2.astype(jnp.float32), (0, out_p - out_features)).reshape(1, out_p)
    return MLPParams(w1_p, b1_p, w2_p, b2_p, in_features, n_hidden, out_features)


# --------------------------------------------------------------------------
# Kernels
# --------------------------------------------------------------------------

def _mlp_kernel_resident(x_ref, w1_ref, b1_ref, w2_ref, b2_ref, out_ref):
    # linear1 + ReLU: MXU matmul with f32 accumulation, bias/ReLU on the VPU.
    h = jnp.dot(x_ref[...], w1_ref[...], preferred_element_type=jnp.float32)
    h = jnp.maximum(h + b1_ref[...], 0.0)
    # linear2 + ReLU: cast intermediate back to the MXU-native compute dtype.
    h = h.astype(w2_ref.dtype)
    o = jnp.dot(h, w2_ref[...], preferred_element_type=jnp.float32)
    out_ref[...] = jnp.maximum(o + b2_ref[...], 0.0).astype(out_ref.dtype)


def _mlp_kernel_stream(x_ref, w1_ref, b1_ref, w2_ref, b2_ref, out_ref, acc_ref):
    # Hidden dimension streamed (last grid axis, "arbitrary").  ReLU is
    # elementwise over hidden, so per-chunk relu + accumulate is exact.
    k = pl.program_id(1)

    @pl.when(k == 0)
    def _init():
        acc_ref[...] = jnp.zeros_like(acc_ref)

    h = jnp.dot(x_ref[...], w1_ref[...], preferred_element_type=jnp.float32)
    h = jnp.maximum(h + b1_ref[...], 0.0).astype(w2_ref.dtype)
    acc_ref[...] += jnp.dot(h, w2_ref[...], preferred_element_type=jnp.float32)

    @pl.when(k == pl.num_programs(1) - 1)
    def _finalize():
        out_ref[...] = jnp.maximum(acc_ref[...] + b2_ref[...],
                                   0.0).astype(out_ref.dtype)


# --------------------------------------------------------------------------
# Wrappers
# --------------------------------------------------------------------------

def _pick_bm(B: int, block_m: int):
    bm = min(block_m, _round_up(B, 8))
    b_p = _round_up(B, bm)
    # v7x has 2 TensorCores: give the "parallel" batch axis >= 2 steps when
    # there is enough work so it can shard across both (harmless on v5e/v6e).
    if b_p // bm < 2 and B >= 64:
        bm = _round_up(pl.cdiv(B, 2), 8)
        b_p = _round_up(B, bm)
    return bm, b_p


def _run_resident(x_p, params: MLPParams, *, bm, b_p, capacity, flops):
    in_p, h_p = params.w1.shape
    out_p = params.w2.shape[1]
    wsize = jnp.dtype(params.w1.dtype).itemsize
    n_b = b_p // bm

    need = (2 * bm * in_p * wsize                      # x tiles (double buffered)
            + 2 * (in_p * h_p + h_p * out_p) * wsize   # weights (worst case x2)
            + 2 * (h_p + out_p) * 4                    # biases
            + 2 * bm * out_p * 4                       # out tiles
            + bm * h_p * 4)                            # f32 intermediate h
    vmem_limit = min(capacity, max(int(need * 1.5), 32 * 1024 * 1024))

    # Resident weights are read from HBM once.
    bytes_accessed = (b_p * in_p * wsize + (in_p * h_p + h_p * out_p) * wsize
                      + (h_p + out_p) * 4 + b_p * out_p * 4)

    def build(weight_mode):
        def wspec(shape):
            if weight_mode is None:
                return pl.BlockSpec(shape, lambda i: (0, 0))
            return pl.BlockSpec(shape, lambda i: (0, 0), pipeline_mode=weight_mode)

        return pl.pallas_call(
            _mlp_kernel_resident,
            out_shape=jax.ShapeDtypeStruct((b_p, out_p), jnp.float32),
            grid_spec=pltpu.PrefetchScalarGridSpec(
                num_scalar_prefetch=0,
                grid=(n_b,),
                in_specs=[
                    pl.BlockSpec((bm, in_p), lambda i: (i, 0)),   # x tile
                    wspec((in_p, h_p)),                           # w1 (resident)
                    wspec((1, h_p)),                              # b1
                    wspec((h_p, out_p)),                          # w2 (resident)
                    wspec((1, out_p)),                            # b2
                ],
                out_specs=pl.BlockSpec((bm, out_p), lambda i: (i, 0)),
            ),
            compiler_params=pltpu.CompilerParams(
                dimension_semantics=("parallel",),
                vmem_limit_bytes=vmem_limit),
            cost_estimate=pl.CostEstimate(
                flops=flops, transcendentals=0, bytes_accessed=bytes_accessed),
        )

    args = (x_p, params.w1, params.b1, params.w2, params.b2)
    try:
        # Grid-invariant weights: single buffering halves their VMEM footprint.
        return build(pl.Buffered(1))(*args)
    except Exception:
        # This JAX build rejects buffer_count=1 -> fall back to default
        # double buffering (correct, just uses more VMEM).
        return build(None)(*args)


def _run_stream(x_p, params: MLPParams, *, bm, b_p, capacity, flops):
    in_p, h_p = params.w1.shape
    out_p = params.w2.shape[1]
    wsize = jnp.dtype(params.w1.dtype).itemsize
    n_b = b_p // bm

    # Hidden-chunk size: largest of {512, 256, 128} dividing h_p.
    th = next(t for t in (512, 256, 128) if h_p % t == 0)
    n_h = h_p // th

    need = (2 * bm * in_p * wsize
            + 2 * (in_p * th + th * out_p) * wsize     # streamed weight chunks
            + 2 * (th + out_p) * 4
            + 2 * bm * out_p * 4
            + bm * out_p * 4                           # accumulator scratch
            + bm * th * 4)                             # f32 intermediate h chunk
    vmem_limit = min(capacity, max(int(need * 1.5), 32 * 1024 * 1024))

    # Streamed weights are re-read once per batch tile.
    bytes_accessed = (b_p * in_p * wsize
                      + n_b * (in_p * h_p + h_p * out_p) * wsize
                      + (h_p + out_p) * 4 + b_p * out_p * 4)

    return pl.pallas_call(
        _mlp_kernel_stream,
        out_shape=jax.ShapeDtypeStruct((b_p, out_p), jnp.float32),
        grid_spec=pltpu.PrefetchScalarGridSpec(
            num_scalar_prefetch=0,
            grid=(n_b, n_h),                            # reduction (hidden) axis last
            in_specs=[
                pl.BlockSpec((bm, in_p), lambda i, k: (i, 0)),   # x tile
                pl.BlockSpec((in_p, th), lambda i, k: (0, k)),   # w1 chunk
                pl.BlockSpec((1, th), lambda i, k: (0, k)),      # b1 chunk
                pl.BlockSpec((th, out_p), lambda i, k: (k, 0)),  # w2 chunk
                pl.BlockSpec((1, out_p), lambda i, k: (0, 0)),   # b2
            ],
            out_specs=pl.BlockSpec((bm, out_p), lambda i, k: (i, 0)),
            scratch_shapes=[pltpu.VMEM((bm, out_p), jnp.float32)],
        ),
        compiler_params=pltpu.CompilerParams(
            dimension_semantics=("parallel", "arbitrary"),
            vmem_limit_bytes=vmem_limit),
        cost_estimate=pl.CostEstimate(
            flops=flops, transcendentals=0, bytes_accessed=bytes_accessed),
    )(x_p, params.w1, params.b1, params.w2, params.b2)


def mlp_pallas_batched(x, params: MLPParams, *, block_m: int = 256,
                       force_stream: bool = False):
    """x: (B, in_features) f32/bf16.  Returns (B, out_features) f32."""
    B, in_features = x.shape
    assert in_features == params.in_features
    in_p, h_p = params.w1.shape
    out_p = params.w2.shape[1]
    cdtype = params.w1.dtype
    wsize = jnp.dtype(cdtype).itemsize

    bm, b_p = _pick_bm(B, block_m)
    x_p = jnp.pad(x.astype(cdtype), ((0, b_p - B), (0, in_p - in_features)))

    capacity = _vmem_capacity_bytes()
    # Conservative (double-buffered) resident-weight footprint; if it does not
    # comfortably fit the per-core VMEM, stream the hidden dimension instead.
    weights_bytes_db = 2 * (in_p * h_p + h_p * out_p) * wsize
    use_stream = force_stream or (weights_bytes_db > 0.6 * capacity)

    flops = 2 * B * (params.in_features * params.n_hidden
                     + params.n_hidden * params.out_features)

    if use_stream:
        out_padded = _run_stream(x_p, params, bm=bm, b_p=b_p,
                                 capacity=capacity, flops=flops)
    else:
        out_padded = _run_resident(x_p, params, bm=bm, b_p=b_p,
                                   capacity=capacity, flops=flops)
    return out_padded[:B, :params.out_features]


def mlp_pallas(din, params: MLPParams):
    """Module-semantics wrapper: din (dim0, dim1) -> (out_features,).

    Note: B=1 is latency-bound by design; batch vectors through
    mlp_pallas_batched when throughput matters.
    """
    dim0, dim1 = din.shape
    x = din.reshape(1, dim0 * dim1)          # flatten outside the kernel (glue)
    return mlp_pallas_batched(x, params).reshape(-1)


def mlp_ref(x2d, w1, b1, w2, b2):
    h = jnp.maximum(x2d @ w1 + b1, 0.0)
    return jnp.maximum(h @ w2 + b2, 0.0)


if __name__ == "__main__":
    key = jax.random.PRNGKey(0)
    k_x, k_w1, k_b1, k_w2, k_b2, k_xb, k2 = jax.random.split(key, 7)

    # Shapes consistent with the forward: din (dim0, dim1), dim0*dim1 == in_features.
    dim0, dim1 = 2, 16
    in_features = dim0 * dim1          # 32
    n_hidden = 32
    out_features = 16

    bound1 = 1.0 / (in_features ** 0.5)
    bound2 = 1.0 / (n_hidden ** 0.5)
    din = jax.random.normal(k_x, (dim0, dim1), dtype=jnp.float32)
    w1 = jax.random.uniform(k_w1, (in_features, n_hidden), jnp.float32, -bound1, bound1)
    b1 = jax.random.uniform(k_b1, (n_hidden,), jnp.float32, -bound1, bound1)
    w2 = jax.random.uniform(k_w2, (n_hidden, out_features), jnp.float32, -bound2, bound2)
    b2 = jax.random.uniform(k_b2, (out_features,), jnp.float32, -bound2, bound2)

    # 1) Module-semantics path with the f32 fallback dtype (exact vs reference).
    params_f32 = prepare_mlp_params(w1, b1, w2, b2, compute_dtype=jnp.float32)
    out = jax.block_until_ready(mlp_pallas(din, params_f32))
    ref = mlp_ref(din.reshape(1, in_features), w1, b1, w2, b2).reshape(-1)
    assert out.shape == (out_features,)
    assert jnp.allclose(out, ref, atol=1e-5, rtol=1e-5)

    # 2) Batched path with the default bf16 compute dtype (perf path).
    params_bf16 = prepare_mlp_params(w1, b1, w2, b2)     # bf16 operands, f32 acc
    B = 256
    xb = jax.random.normal(k_xb, (B, in_features), dtype=jnp.float32)
    outb = jax.block_until_ready(mlp_pallas_batched(xb, params_bf16))
    refb = mlp_ref(xb, w1, b1, w2, b2)
    assert outb.shape == (B, out_features)
    assert jnp.allclose(outb, refb, atol=5e-2, rtol=5e-2)   # bf16 operand rounding

    # 3) Hidden-streaming (VMEM fallback) path, forced at a small size so the
    #    accumulator / pl.when init-finalize logic is exercised (3 hidden chunks).
    in2, hid2, out2, B2 = 64, 384, 96, 64
    ks = jax.random.split(k2, 5)
    x2 = jax.random.normal(ks[0], (B2, in2), dtype=jnp.float32)
    w1b = jax.random.uniform(ks[1], (in2, hid2), jnp.float32,
                             -1.0 / in2 ** 0.5, 1.0 / in2 ** 0.5)
    b1b = jax.random.uniform(ks[2], (hid2,), jnp.float32,
                             -1.0 / in2 ** 0.5, 1.0 / in2 ** 0.5)
    w2b = jax.random.uniform(ks[3], (hid2, out2), jnp.float32,
                             -1.0 / hid2 ** 0.5, 1.0 / hid2 ** 0.5)
    b2b = jax.random.uniform(ks[4], (out2,), jnp.float32,
                             -1.0 / hid2 ** 0.5, 1.0 / hid2 ** 0.5)
    params2 = prepare_mlp_params(w1b, b1b, w2b, b2b)
    out2a = jax.block_until_ready(mlp_pallas_batched(x2, params2, force_stream=True))
    ref2 = mlp_ref(x2, w1b, b1b, w2b, b2b)
    assert out2a.shape == (B2, out2)
    assert jnp.allclose(out2a, ref2, atol=5e-2, rtol=5e-2)

    print("KERNEL_OK")
</pallas_src>

<mosaic_0001>
module attributes {stable_mosaic.version = 11 : i64} {
  func.func @_mlp_kernel_resident(%arg0: i32, %arg1: memref<8x128xf32, #tpu.memory_space<vmem>>, %arg2: memref<128x128xf32, #tpu.memory_space<vmem>>, %arg3: memref<1x128xf32, #tpu.memory_space<vmem>>, %arg4: memref<128x128xf32, #tpu.memory_space<vmem>>, %arg5: memref<1x128xf32, #tpu.memory_space<vmem>>, %arg6: memref<8x128xf32, #tpu.memory_space<vmem>>) attributes {dimension_semantics = [#tpu.dimension_semantics<parallel>], iteration_bounds = array<i64: 1>, scalar_prefetch = 0 : i64, scratch_operands = 0 : i64, tpu.core_type = #tpu.core_type<tc>, window_params = [{transform_indices = @transform_0, window_bounds = array<i64: 8, 128>}, {pipeline_mode = #tpu.pipeline_mode<synchronous>, transform_indices = @transform_1, window_bounds = array<i64: 128, 128>}, {pipeline_mode = #tpu.pipeline_mode<synchronous>, transform_indices = @transform_2, window_bounds = array<i64: 1, 128>}, {pipeline_mode = #tpu.pipeline_mode<synchronous>, transform_indices = @transform_3, window_bounds = array<i64: 128, 128>}, {pipeline_mode = #tpu.pipeline_mode<synchronous>, transform_indices = @transform_4, window_bounds = array<i64: 1, 128>}, {transform_indices = @transform_5, window_bounds = array<i64: 8, 128>}]} {
    %c0 = arith.constant 0 : index
    %c0_0 = arith.constant 0 : index
    %0 = vector.load %arg1[%c0, %c0_0] : memref<8x128xf32, #tpu.memory_space<vmem>>, vector<8x128xf32>
    %c0_1 = arith.constant 0 : index
    %c0_2 = arith.constant 0 : index
    %1 = vector.load %arg2[%c0_1, %c0_2] : memref<128x128xf32, #tpu.memory_space<vmem>>, vector<128x128xf32>
    %cst = arith.constant dense<0.000000e+00> : vector<8x128xf32>
    %2 = tpu.matmul %0, %1, %cst {dimension_numbers = #tpu.dot_dimension_numbers<[1], [0], [0], [1], [0, 0, 1, 1], [], []>} : vector<8x128xf32>, vector<128x128xf32>, vector<8x128xf32> -> vector<8x128xf32>
    %c0_3 = arith.constant 0 : index
    %c0_4 = arith.constant 0 : index
    %3 = vector.load %arg3[%c0_3, %c0_4] : memref<1x128xf32, #tpu.memory_space<vmem>>, vector<1x128xf32>
    %4 = vector.broadcast %3 : vector<1x128xf32> to vector<8x128xf32>
    %5 = arith.addf %2, %4 : vector<8x128xf32>
    %cst_5 = arith.constant 0.000000e+00 : f32
    %6 = vector.broadcast %cst_5 : f32 to vector<8x128xf32>
    %7 = arith.maximumf %5, %6 : vector<8x128xf32>
    %c0_6 = arith.constant 0 : index
    %c0_7 = arith.constant 0 : index
    %8 = vector.load %arg4[%c0_6, %c0_7] : memref<128x128xf32, #tpu.memory_space<vmem>>, vector<128x128xf32>
    %cst_8 = arith.constant dense<0.000000e+00> : vector<8x128xf32>
    %9 = tpu.matmul %7, %8, %cst_8 {dimension_numbers = #tpu.dot_dimension_numbers<[1], [0], [0], [1], [0, 0, 1, 1], [], []>} : vector<8x128xf32>, vector<128x128xf32>, vector<8x128xf32> -> vector<8x128xf32>
    %c0_9 = arith.constant 0 : index
    %c0_10 = arith.constant 0 : index
    %10 = vector.load %arg5[%c0_9, %c0_10] : memref<1x128xf32, #tpu.memory_space<vmem>>, vector<1x128xf32>
    %11 = vector.broadcast %10 : vector<1x128xf32> to vector<8x128xf32>
    %12 = arith.addf %9, %11 : vector<8x128xf32>
    %cst_11 = arith.constant 0.000000e+00 : f32
    %13 = vector.broadcast %cst_11 : f32 to vector<8x128xf32>
    %14 = arith.maximumf %12, %13 : vector<8x128xf32>
    %c0_12 = arith.constant 0 : index
    %c0_13 = arith.constant 0 : index
    %15 = vector.load %arg6[%c0_12, %c0_13] : memref<8x128xf32, #tpu.memory_space<vmem>>, vector<8x128xf32>
    tpu.vector_store %arg6[%c0_12, %c0_13], %14 {strides = array<i32>} : memref<8x128xf32, #tpu.memory_space<vmem>>, vector<8x128xf32>,
    return
  }
  func.func @transform_0(%arg0: i32) -> (i32, i32) {
    %c0_i32 = arith.constant 0 : i32
    %c0_i32_0 = arith.constant 0 : i32
    return %arg0, %c0_i32 : i32, i32
  }
  func.func @transform_1(%arg0: i32) -> (i32, i32) {
    %c0_i32 = arith.constant 0 : i32
    %c0_i32_0 = arith.constant 0 : i32
    %c0_i32_1 = arith.constant 0 : i32
    return %c0_i32, %c0_i32_0 : i32, i32
  }
  func.func @transform_2(%arg0: i32) -> (i32, i32) {
    %c0_i32 = arith.constant 0 : i32
    %c0_i32_0 = arith.constant 0 : i32
    %c0_i32_1 = arith.constant 0 : i32
    return %c0_i32, %c0_i32_0 : i32, i32
  }
  func.func @transform_3(%arg0: i32) -> (i32, i32) {
    %c0_i32 = arith.constant 0 : i32
    %c0_i32_0 = arith.constant 0 : i32
    %c0_i32_1 = arith.constant 0 : i32
    return %c0_i32, %c0_i32_0 : i32, i32
  }
  func.func @transform_4(%arg0: i32) -> (i32, i32) {
    %c0_i32 = arith.constant 0 : i32
    %c0_i32_0 = arith.constant 0 : i32
    %c0_i32_1 = arith.constant 0 : i32
    return %c0_i32, %c0_i32_0 : i32, i32
  }
  func.func @transform_5(%arg0: i32) -> (i32, i32) {
    %c0_i32 = arith.constant 0 : i32
    %c0_i32_0 = arith.constant 0 : i32
    return %arg0, %c0_i32 : i32, i32
  }
}

module attributes {stable_mosaic.version = 11 : i64} {
  func.func @_mlp_kernel_resident(%arg0: i32, %arg1: memref<8x128xf32, #tpu.memory_space<vmem>>, %arg2: memref<128x128xf32, #tpu.memory_space<vmem>>, %arg3: memref<1x128xf32, #tpu.memory_space<vmem>>, %arg4: memref<128x128xf32, #tpu.memory_space<vmem>>, %arg5: memref<1x128xf32, #tpu.memory_space<vmem>>, %arg6: memref<8x128xf32, #tpu.memory_space<vmem>>) attributes {dimension_semantics = [#tpu.dimension_semantics<parallel>], iteration_bounds = array<i64: 1>, scalar_prefetch = 0 : i64, scratch_operands = 0 : i64, tpu.core_type = #tpu.core_type<tc>, window_params = [{transform_indices = @transform_0, window_bounds = array<i64: 8, 128>}, {pipeline_mode = #tpu.pipeline_mode<synchronous>, transform_indices = @transform_1, window_bounds = array<i64: 128, 128>}, {pipeline_mode = #tpu.pipeline_mode<synchronous>, transform_indices = @transform_2, window_bounds = array<i64: 1, 128>}, {pipeline_mode = #tpu.pipeline_mode<synchronous>, transform_indices = @transform_3, window_bounds = array<i64: 128, 128>}, {pipeline_mode = #tpu.pipeline_mode<synchronous>, transform_indices = @transform_4, window_bounds = array<i64: 1, 128>}, {transform_indices = @transform_5, window_bounds = array<i64: 8, 128>}]} {
    %c0 = arith.constant 0 : index
    %c0_0 = arith.constant 0 : index
    %0 = vector.load %arg1[%c0, %c0_0] : memref<8x128xf32, #tpu.memory_space<vmem>>, vector<8x128xf32>
    %c0_1 = arith.constant 0 : index
    %c0_2 = arith.constant 0 : index
    %1 = vector.load %arg2[%c0_1, %c0_2] : memref<128x128xf32, #tpu.memory_space<vmem>>, vector<128x128xf32>
    %cst = arith.constant dense<0.000000e+00> : vector<8x128xf32>
    %2 = tpu.matmul %0, %1, %cst {dimension_numbers = #tpu.dot_dimension_numbers<[1], [0], [0], [1], [0, 0, 1, 1], [], []>} : vector<8x128xf32>, vector<128x128xf32>, vector<8x128xf32> -> vector<8x128xf32>
    %c0_3 = arith.constant 0 : index
    %c0_4 = arith.constant 0 : index
    %3 = vector.load %arg3[%c0_3, %c0_4] : memref<1x128xf32, #tpu.memory_space<vmem>>, vector<1x128xf32>
    %4 = vector.broadcast %3 : vector<1x128xf32> to vector<8x128xf32>
    %5 = arith.addf %2, %4 : vector<8x128xf32>
    %cst_5 = arith.constant 0.000000e+00 : f32
    %6 = vector.broadcast %cst_5 : f32 to vector<8x128xf32>
    %7 = arith.maximumf %5, %6 : vector<8x128xf32>
    %c0_6 = arith.constant 0 : index
    %c0_7 = arith.constant 0 : index
    %8 = vector.load %arg4[%c0_6, %c0_7] : memref<128x128xf32, #tpu.memory_space<vmem>>, vector<128x128xf32>
    %cst_8 = arith.constant dense<0.000000e+00> : vector<8x128xf32>
    %9 = tpu.matmul %7, %8, %cst_8 {dimension_numbers = #tpu.dot_dimension_numbers<[1], [0], [0], [1], [0, 0, 1, 1], [], []>} : vector<8x128xf32>, vector<128x128xf32>, vector<8x128xf32> -> vector<8x128xf32>
    %c0_9 = arith.constant 0 : index
    %c0_10 = arith.constant 0 : index
    %10 = vector.load %arg5[%c0_9, %c0_10] : memref<1x128xf32, #tpu.memory_space<vmem>>, vector<1x128xf32>
    %11 = vector.broadcast %10 : vector<1x128xf32> to vector<8x128xf32>
    %12 = arith.addf %9, %11 : vector<8x128xf32>
    %cst_11 = arith.constant 0.000000e+00 : f32
    %13 = vector.broadcast %cst_11 : f32 to vector<8x128xf32>
    %14 = arith.maximumf %12, %13 : vector<8x128xf32>
    %c0_12 = arith.constant 0 : index
    %c0_13 = arith.constant 0 : index
    %15 = vector.load %arg6[%c0_12, %c0_13] : memref<8x128xf32, #tpu.memory_space<vmem>>, vector<8x128xf32>
    tpu.vector_store %arg6[%c0_12, %c0_13], %14 {strides = array<i32>} : memref<8x128xf32, #tpu.memory_space<vmem>>, vector<8x128xf32>,
    return
  }
  func.func @transform_0(%arg0: i32) -> (i32, i32) {
    %c0_i32 = arith.constant 0 : i32
    %c0_i32_0 = arith.constant 0 : i32
    return %arg0, %c0_i32 : i32, i32
  }
  func.func @transform_1(%arg0: i32) -> (i32, i32) {
    %c0_i32 = arith.constant 0 : i32
    %c0_i32_0 = arith.constant 0 : i32
    %c0_i32_1 = arith.constant 0 : i32
    return %c0_i32, %c0_i32_0 : i32, i32
  }
  func.func @transform_2(%arg0: i32) -> (i32, i32) {
    %c0_i32 = arith.constant 0 : i32
    %c0_i32_0 = arith.constant 0 : i32
    %c0_i32_1 = arith.constant 0 : i32
    return %c0_i32, %c0_i32_0 : i32, i32
  }
  func.func @transform_3(%arg0: i32) -> (i32, i32) {
    %c0_i32 = arith.constant 0 : i32
    %c0_i32_0 = arith.constant 0 : i32
    %c0_i32_1 = arith.constant 0 : i32
    return %c0_i32, %c0_i32_0 : i32, i32
  }
  func.func @transform_4(%arg0: i32) -> (i32, i32) {
    %c0_i32 = arith.constant 0 : i32
    %c0_i32_0 = arith.constant 0 : i32
    %c0_i32_1 = arith.constant 0 : i32
    return %c0_i32, %c0_i32_0 : i32, i32
  }
  func.func @transform_5(%arg0: i32) -> (i32, i32) {
    %c0_i32 = arith.constant 0 : i32
    %c0_i32_0 = arith.constant 0 : i32
    return %arg0, %c0_i32 : i32, i32
  }
}

</mosaic_0001>

<bundles_post_ra>
// kernel: tpu_custom_call.1
= control target key start
LH: loop header
LB: loop body
LE: loop exit
PB: predicated region body
PF: predicated region fallthrough
CT: control target
= control target key end

     0   :  { %10 = vsyncpa [#allocation3], 0  ;;  %s638_s0 = inlined_call_operand.hbm [shape: f32[8,128], index: 0, kind: input, shape index: {}]   ;;  %s639_s1 = inlined_call_operand.hbm [shape: f32[128,128], index: 1, kind: input, shape index: {}]   ;;  %s640_s2 = inlined_call_operand.vmem [shape: f32[1,128], index: 2, kind: input, shape index: {}]   ;;  %s641_s3 = inlined_call_operand.hbm [shape: f32[128,128], index: 3, kind: input, shape index: {}]   ;;  %s642_s4 = inlined_call_operand.vmem [shape: f32[1,128], index: 4, kind: input, shape index: {}]   ;;  %s643_s5 = inlined_call_operand.hbm [shape: f32[8,128], index: 5, kind: output, shape index: {}]  }
   0x1   :  { %11 = vsyncpa [#allocation6], 0 }
   0x2   :  { %12 = vsyncpa [#allocation4], 0  ;;  %s523_s18 = smov [#allocation5]   ;;  %s429_s22 = scalar_lea.hbm %s639_s1, 2048 }
   0x3   :  { %s28_s19 = sshll.u32 %s523_s18, 4  ;;  %p430_p0 = scmp.ne.s32.totalorder %s639_s1, %s429_s22  ;;  %s29_s19 = int_to_ptr.vmem [resolvable:$true] %s28_s19 }
   0x4   :  { %p433_p1 = scmp.lt.u32.totalorder %s429_s22, %s639_s1 }
   0x6   :  { %p435_p2 = pnand %p433_p1, %p430_p0 }
   0x8   :  { %438 = shalt.err (!%p435_p2)
}
   0x9   :  { %s439_s27 = scalar_lea.vmem %s29_s19, 2048  ;;  %p444_p4 = scmp.lt.s32.totalorder %s29_s19, %s29_s19 }
   0xa   :  { %p440_p3 = scmp.ne.s32.totalorder %s29_s19, %s439_s27  ;;  %p445_p5 = scmp.lt.s32.totalorder %s439_s27, %s439_s27 }
   0xc   :  { %p446_p6 = por %p445_p5, %p444_p4 }
   0xe   :  { %p447_p7 = pnand %p446_p6, %p440_p3 }
  0x10   :  { %450 = shalt.err (!%p447_p7)
}
  0x11   :  { %s524_s28 = smov 128   ;;  %s525_s29 = smov 8  }
  0x12   :  { %34 = dma.hbm_to_vmem [thread:$0]  %s639_s1, 2048, %s29_s19, [#allocation6], %s524_s28, %s524_s28, %s525_s29  }
  0x13   :  { %s526_s7 = smov [#allocation2]   ;;  %s527_s9 = smov [#allocation7]  }
  0x14   :  { %s19_s8 = sshll.u32 %s526_s7, 4  ;;  %s42_s10 = sshll.u32 %s527_s9, 4  ;;  %s20_s8 = int_to_ptr.vmem [resolvable:$true] %s19_s8  ;;  %s43_s10 = int_to_ptr.vmem [resolvable:$true] %s42_s10 }
  0x15   :  { %s451_s13 = scalar_lea.hbm %s638_s0, 128 }
  0x16   :  { %p452_p8 = scmp.ne.s32.totalorder %s638_s0, %s451_s13  ;;  %p455_p9 = scmp.lt.u32.totalorder %s451_s13, %s638_s0 }
  0x18   :  { %p457_p10 = pnand %p455_p9, %p452_p8 }
  0x1a   :  { %460 = shalt.err (!%p457_p10)
}
  0x1b   :  { %s461_s1 = scalar_lea.vmem %s20_s8, 128  ;;  %p466_p12 = scmp.lt.s32.totalorder %s20_s8, %s20_s8 }
  0x1c   :  { %p462_p11 = scmp.ne.s32.totalorder %s20_s8, %s461_s1  ;;  %p467_p13 = scmp.lt.s32.totalorder %s461_s1, %s461_s1 }
  0x1e   :  { %p468_p0 = por %p467_p13, %p466_p12 }
  0x20   :  { %p469_p1 = pnand %p468_p0, %p462_p11 }
  0x22   :  { %472 = shalt.err (!%p469_p1)
}
  0x23   :  { %22 = dma.hbm_to_vmem [thread:$0]  %s638_s0, 128, %s20_s8, [#allocation3]  }
  0x24   :  { %s473_s22 = scalar_lea.hbm %s641_s3, 2048 }
  0x25   :  { %p474_p2 = scmp.ne.s32.totalorder %s641_s3, %s473_s22  ;;  %p477_p3 = scmp.lt.u32.totalorder %s473_s22, %s641_s3 }
  0x27   :  { %p479_p4 = pnand %p477_p3, %p474_p2 }
  0x29   :  { %482 = shalt.err (!%p479_p4)
}
  0x2a   :  { %s483_s27 = scalar_lea.vmem %s43_s10, 2048  ;;  %p488_p6 = scmp.lt.s32.totalorder %s43_s10, %s43_s10 }
  0x2b   :  { %p484_p5 = scmp.ne.s32.totalorder %s43_s10, %s483_s27  ;;  %p489_p7 = scmp.lt.s32.totalorder %s483_s27, %s483_s27 }
  0x2d   :  { %p490_p8 = por %p489_p7, %p488_p6 }
  0x2f   :  { %p491_p9 = pnand %p490_p8, %p484_p5 }
  0x31   :  { %494 = shalt.err (!%p491_p9)
}
  0x32   :  { %48 = dma.hbm_to_vmem [thread:$0]  %s641_s3, 2048, %s43_s10, [#allocation6], %s524_s28, %s524_s28, %s525_s29  }
  0x33   :  { %517 = dma.done.wait [#allocation3], 128  }
  0x34   :  { %518 = vsyncadd [#allocation3], 4294967168 }
  0x35   :  { %519 = dma.done.wait [#allocation6], 4096  }
  0x36   :  { %520 = vsyncadd [#allocation6], 4294963200  ;;  %v528_v0 = vmov 0.0|0.0   ;;  %vm529_vm0 = vmmov 0   ;;  %v530_v1 = vmov 0.0   ;;  %v61_v2 = vld [vmem:[#allocation5] sm:$0xff] }
  0x37   :  { %372 = vmatprep.subr.bf16.mxu0 %v528_v0  ;;  %334 = vmatprep.mubr.msk.f32.mxu0 %vm529_vm0, %v530_v1  ;;  %v62_v3 = vld [vmem:[#allocation5 + $0x8] sm:$0xff]  ;;  %v63_v4 = vld [vmem:[#allocation5 + $0x10] sm:$0xff]  ;;  %v64_v6 = vld [vmem:[#allocation5 + $0x18] sm:$0xff]  ;;  %s531_s7 = smov [#allocation8]  }
  0x38   :  { %396 = vmatprep.subr.bf16.mxu1 %v528_v0  ;;  %369 = vmatprep.mubr.msk.f32.mxu1 %vm529_vm0, %v530_v1  ;;  %v373_v5 = vpack.c.bf16 %v62_v3, %v61_v2  ;;  %v376_v7 = vpack.c.bf16 %v64_v6, %v63_v4  ;;  %v65_v8 = vld [vmem:[#allocation5 + $0x20] sm:$0xff]  ;;  %v66_v9 = vld [vmem:[#allocation5 + $0x28] sm:$0xff]  ;;  %v157_v12 = vld [vmem:[#allocation7 + $0x10] sm:$0xff]  ;;  %s256_s8 = sshll.u32 %s531_s7, 4  ;;  %s257_s8 = int_to_ptr.vmem [resolvable:$true] %s256_s8 }
  0x39   :  { %v155_v10 = vld [vmem:[#allocation7] sm:$0xff]  ;;  %v156_v11 = vld [vmem:[#allocation7 + $0x8] sm:$0xff]  ;;  %v158_v13 = vld [vmem:[#allocation7 + $0x18] sm:$0xff]  ;;  %v379_v14 = vpack.c.bf16 %v66_v9, %v65_v8  ;;  %s495_s9 = scalar_lea.vmem %s257_s8, 128  ;;  %p500_p11 = scmp.lt.s32.totalorder %s257_s8, %s257_s8 }
  0x3a   :  { %374 = vmatpush3.bf16.msra.mxu0 %v373_v5  ;;  %v397_v15 = vpack.c.bf16 %v156_v11, %v155_v10  ;;  %v67_v16 = vld [vmem:[#allocation5 + $0x30] sm:$0xff]  ;;  %v68_v17 = vld [vmem:[#allocation5 + $0x38] sm:$0xff]  ;;  %v400_v18 = vpack.c.bf16 %v158_v13, %v157_v12  ;;  %v159_v19 = vld [vmem:[#allocation7 + $0x20] sm:$0xff]  ;;  %p496_p10 = scmp.ne.s32.totalorder %s257_s8, %s495_s9  ;;  %p501_p12 = scmp.lt.s32.totalorder %s495_s9, %s495_s9 }
  0x3b   :  { %375 = vmatprep.subr.bf16.mxu0 %v528_v0  ;;  %v160_v20 = vld [vmem:[#allocation7 + $0x28] sm:$0xff]  ;;  %v382_v21 = vpack.c.bf16 %v68_v17, %v67_v16  ;;  %v69_v22 = vld [vmem:[#allocation5 + $0x40] sm:$0xff]  ;;  %v161_v25 = vld [vmem:[#allocation7 + $0x30] sm:$0xff] }
  0x3c   :  { %398 = vmatpush3.bf16.msra.mxu1 %v397_v15  ;;  %v70_v23 = vld [vmem:[#allocation5 + $0x48] sm:$0xff]  ;;  %v403_v24 = vpack.c.bf16 %v160_v20, %v159_v19  ;;  %v162_v26 = vld [vmem:[#allocation7 + $0x38] sm:$0xff]  ;;  %v71_v28 = vld [vmem:[#allocation5 + $0x50] sm:$0xff]  ;;  %p502_p13 = por %p501_p12, %p500_p11 }
  0x3d   :  { %399 = vmatprep.subr.bf16.mxu1 %v528_v0  ;;  %v385_v27 = vpack.c.bf16 %v70_v23, %v69_v22  ;;  %v72_v29 = vld [vmem:[#allocation5 + $0x58] sm:$0xff]  ;;  %v406_v30 = vpack.c.bf16 %v162_v26, %v161_v25  ;;  %v163_v31 = vld [vmem:[#allocation7 + $0x40] sm:$0xff]  ;;  %v164_v32 = vld [vmem:[#allocation7 + $0x48] sm:$0xff] }
  0x3e   :  { %377 = vmatpush3.bf16.msra.mxu0 %v376_v7  ;;  %v388_v33 = vpack.c.bf16 %v72_v29, %v71_v28  ;;  %v73_v34 = vld [vmem:[#allocation5 + $0x60] sm:$0xff]  ;;  %v74_v35 = vld [vmem:[#allocation5 + $0x68] sm:$0xff]  ;;  %v409_v36 = vpack.c.bf16 %v164_v32, %v163_v31  ;;  %v165_v37 = vld [vmem:[#allocation7 + $0x50] sm:$0xff]  ;;  %p503_p0 = pnand %p502_p13, %p496_p10 }
  0x3f   :  { %378 = vmatprep.subr.bf16.mxu0 %v528_v0  ;;  %v166_v38 = vld [vmem:[#allocation7 + $0x58] sm:$0xff]  ;;  %v391_v39 = vpack.c.bf16 %v74_v35, %v73_v34  ;;  %v75_v40 = vld [vmem:[#allocation5 + $0x70] sm:$0xff]  ;;  %v167_v43 = vld [vmem:[#allocation7 + $0x60] sm:$0xff] }
  0x40   :  { %401 = vmatpush3.bf16.msra.mxu1 %v400_v18  ;;  %v76_v41 = vld [vmem:[#allocation5 + $0x78] sm:$0xff]  ;;  %v412_v42 = vpack.c.bf16 %v166_v38, %v165_v37  ;;  %v168_v44 = vld [vmem:[#allocation7 + $0x68] sm:$0xff]  ;;  %v169_v48 = vld [vmem:[#allocation7 + $0x70] sm:$0xff] }
  0x41   :  { %402 = vmatprep.subr.bf16.mxu1 %v528_v0  ;;  %v394_v45 = vpack.c.bf16 %v76_v41, %v75_v40  ;;  %v415_v46 = vpack.c.bf16 %v168_v44, %v167_v43  ;;  %v60_v47 = vld [vmem:[#allocation2] sm:$0xff] }
  0x42   :  { %380 = vmatpush3.bf16.msra.mxu0 %v379_v14  ;;  %v170_v49 = vld [vmem:[#allocation7 + $0x78] sm:$0xff] }
  0x43   :  { %381 = vmatprep.subr.bf16.mxu0 %v528_v0  ;;  %v418_v50 = vpack.c.bf16 %v170_v49, %v169_v48  ;;  %v266_v51 = vld [vmem:[%s640_s2] ss:$0 sm:$0xff] }
  0x44   :  { %404 = vmatpush3.bf16.msra.mxu1 %v403_v24  ;;  %v267_v56 = vld [vmem:[%s642_s4] ss:$0 sm:$0xff] }
  0x45   :  { %405 = vmatprep.subr.bf16.mxu1 %v528_v0 }
  0x46   :  { %383 = vmatpush3.bf16.msra.mxu0 %v382_v21 }
  0x47   :  { %384 = vmatprep.subr.bf16.mxu0 %v528_v0 }
  0x48   :  { %407 = vmatpush3.bf16.msra.mxu1 %v406_v30 }
  0x49   :  { %408 = vmatprep.subr.bf16.mxu1 %v528_v0 }
  0x4a   :  { %386 = vmatpush3.bf16.msra.mxu0 %v385_v27 }
  0x4b   :  { %387 = vmatprep.subr.bf16.mxu0 %v528_v0 }
  0x4c   :  { %410 = vmatpush3.bf16.msra.mxu1 %v409_v36 }
  0x4d   :  { %411 = vmatprep.subr.bf16.mxu1 %v528_v0 }
  0x4e   :  { %389 = vmatpush3.bf16.msra.mxu0 %v388_v33 }
  0x4f   :  { %390 = vmatprep.subr.bf16.mxu0 %v528_v0 }
  0x50   :  { %413 = vmatpush3.bf16.msra.mxu1 %v412_v42 }
  0x51   :  { %414 = vmatprep.subr.bf16.mxu1 %v528_v0 }
  0x52   :  { %392 = vmatpush3.bf16.msra.mxu0 %v391_v39 }
  0x53   :  { %393 = vmatprep.subr.bf16.mxu0 %v528_v0 }
  0x54   :  { %416 = vmatpush3.bf16.msra.mxu1 %v415_v46 }
  0x55   :  { %417 = vmatprep.subr.bf16.mxu1 %v528_v0 }
  0x56   :  { %395 = vmatpush3.bf16.msra.mxu0 %v394_v45 }
  0x58   :  { %419 = vmatpush3.bf16.msra.mxu1 %v418_v50 }
  0x59   :  { %335 = vmatmul.mubr.f32.vlgmr.msra.gmra.mrb[0].mxu0 %v60_v47 }
 0x12c   :  { %v150_v52 = vpop.f32.mrb[0].mxu0 }
 0x12d   :  { %v151_v53 = vadd.f32 %v266_v51, %v150_v52  ;;  %v336_v54 = vpop.f32.mrb[1].mxu0 }
 0x12f   :  { %v154_v55 = vmax.f32 %v151_v53, 0.0 }
 0x131   :  { %370 = vmatmul.mubr.f32.vlgmr.msra.gmra.mrb[0].mxu1 %v154_v55 }
 0x204   :  { %v244_v57 = vpop.f32.mrb[0].mxu1 }
 0x205   :  { %v245_v58 = vadd.f32 %v267_v56, %v244_v57  ;;  %v371_v59 = vpop.f32.mrb[1].mxu1 }
 0x207   :  { %v248_v60 = vmax.f32 %v245_v58, 0.0 }
 0x209   :  { %249 = vst [vmem:[#allocation8] sm:$0xff] %v248_v60 }
 0x20a   :  { %506 = shalt.err (!%p503_p0)
}
 0x20b   :  { %s507_s11 = scalar_lea.hbm %s643_s5, 128 }
 0x20c   :  { %p508_p1 = scmp.ne.s32.totalorder %s643_s5, %s507_s11  ;;  %p511_p2 = scmp.lt.u32.totalorder %s507_s11, %s643_s5 }
 0x20e   :  { %p513_p3 = pnand %p511_p2, %p508_p1 }
 0x210   :  { %516 = shalt.err (!%p513_p3)
}
 0x211   :  { %259 = dma.vmem_to_hbm [thread:$0]  %s257_s8, 128, %s643_s5, [#allocation4]  }
 0x212   :  { %521 = dma.done.wait [#allocation4], 128  }
 0x213   :  { %522 = vsyncadd [#allocation4], 4294967168 }
 0x214   :  { %263 = vsyncpa [#allocation3], 1 }
 0x215   :  { %264 = vsyncpa [#allocation6], 1 }
 0x216   :  { %265 = vsyncpa [#allocation4], 1 }

// kernel: tpu_custom_call.1
= control target key start
LH: loop header
LB: loop body
LE: loop exit
PB: predicated region body
PF: predicated region fallthrough
CT: control target
= control target key end

     0   :  { %10 = vsyncpa [#allocation3], 0  ;;  %s638_s0 = inlined_call_operand.hbm [shape: f32[8,128], index: 0, kind: input, shape index: {}]   ;;  %s639_s1 = inlined_call_operand.hbm [shape: f32[128,128], index: 1, kind: input, shape index: {}]   ;;  %s640_s2 = inlined_call_operand.vmem [shape: f32[1,128], index: 2, kind: input, shape index: {}]   ;;  %s641_s3 = inlined_call_operand.hbm [shape: f32[128,128], index: 3, kind: input, shape index: {}]   ;;  %s642_s4 = inlined_call_operand.vmem [shape: f32[1,128], index: 4, kind: input, shape index: {}]   ;;  %s643_s5 = inlined_call_operand.hbm [shape: f32[8,128], index: 5, kind: output, shape index: {}]  }
   0x1   :  { %11 = vsyncpa [#allocation6], 0 }
   0x2   :  { %12 = vsyncpa [#allocation4], 0  ;;  %s523_s18 = smov [#allocation5]   ;;  %s429_s22 = scalar_lea.hbm %s639_s1, 2048 }
   0x3   :  { %s28_s19 = sshll.u32 %s523_s18, 4  ;;  %p430_p0 = scmp.ne.s32.totalorder %s639_s1, %s429_s22  ;;  %s29_s19 = int_to_ptr.vmem [resolvable:$true] %s28_s19 }
   0x4   :  { %p433_p1 = scmp.lt.u32.totalorder %s429_s22, %s639_s1 }
   0x6   :  { %p435_p2 = pnand %p433_p1, %p430_p0 }
   0x8   :  { %438 = shalt.err (!%p435_p2)
}
   0x9   :  { %s439_s27 = scalar_lea.vmem %s29_s19, 2048  ;;  %p444_p4 = scmp.lt.s32.totalorder %s29_s19, %s29_s19 }
   0xa   :  { %p440_p3 = scmp.ne.s32.totalorder %s29_s19, %s439_s27  ;;  %p445_p5 = scmp.lt.s32.totalorder %s439_s27, %s439_s27 }
   0xc   :  { %p446_p6 = por %p445_p5, %p444_p4 }
   0xe   :  { %p447_p7 = pnand %p446_p6, %p440_p3 }
  0x10   :  { %450 = shalt.err (!%p447_p7)
}
  0x11   :  { %s524_s28 = smov 128   ;;  %s525_s29 = smov 8  }
  0x12   :  { %34 = dma.hbm_to_vmem [thread:$0]  %s639_s1, 2048, %s29_s19, [#allocation6], %s524_s28, %s524_s28, %s525_s29  }
  0x13   :  { %s526_s7 = smov [#allocation2]   ;;  %s527_s9 = smov [#allocation7]  }
  0x14   :  { %s19_s8 = sshll.u32 %s526_s7, 4  ;;  %s42_s10 = sshll.u32 %s527_s9, 4  ;;  %s20_s8 = int_to_ptr.vmem [resolvable:$true] %s19_s8  ;;  %s43_s10 = int_to_ptr.vmem [resolvable:$true] %s42_s10 }
  0x15   :  { %s451_s13 = scalar_lea.hbm %s638_s0, 128 }
  0x16   :  { %p452_p8 = scmp.ne.s32.totalorder %s638_s0, %s451_s13  ;;  %p455_p9 = scmp.lt.u32.totalorder %s451_s13, %s638_s0 }
  0x18   :  { %p457_p10 = pnand %p455_p9, %p452_p8 }
  0x1a   :  { %460 = shalt.err (!%p457_p10)
}
  0x1b   :  { %s461_s1 = scalar_lea.vmem %s20_s8, 128  ;;  %p466_p12 = scmp.lt.s32.totalorder %s20_s8, %s20_s8 }
  0x1c   :  { %p462_p11 = scmp.ne.s32.totalorder %s20_s8, %s461_s1  ;;  %p467_p13 = scmp.lt.s32.totalorder %s461_s1, %s461_s1 }
  0x1e   :  { %p468_p0 = por %p467_p13, %p466_p12 }
  0x20   :  { %p469_p1 = pnand %p468_p0, %p462_p11 }
  0x22   :  { %472 = shalt.err (!%p469_p1)
}
  0x23   :  { %22 = dma.hbm_to_vmem [thread:$0]  %s638_s0, 128, %s20_s8, [#allocation3]  }
  0x24   :  { %s473_s22 = scalar_lea.hbm %s641_s3, 2048 }
  0x25   :  { %p474_p2 = scmp.ne.s32.totalorder %s641_s3, %s473_s22  ;;  %p477_p3 = scmp.lt.u32.totalorder %s473_s22, %s641_s3 }
  0x27   :  { %p479_p4 = pnand %p477_p3, %p474_p2 }
  0x29   :  { %482 = shalt.err (!%p479_p4)
}
  0x2a   :  { %s483_s27 = scalar_lea.vmem %s43_s10, 2048  ;;  %p488_p6 = scmp.lt.s32.totalorder %s43_s10, %s43_s10 }
  0x2b   :  { %p484_p5 = scmp.ne.s32.totalorder %s43_s10, %s483_s27  ;;  %p489_p7 = scmp.lt.s32.totalorder %s483_s27, %s483_s27 }
  0x2d   :  { %p490_p8 = por %p489_p7, %p488_p6 }
  0x2f   :  { %p491_p9 = pnand %p490_p8, %p484_p5 }
  0x31   :  { %494 = shalt.err (!%p491_p9)
}
  0x32   :  { %48 = dma.hbm_to_vmem [thread:$0]  %s641_s3, 2048, %s43_s10, [#allocation6], %s524_s28, %s524_s28, %s525_s29  }
  0x33   :  { %517 = dma.done.wait [#allocation3], 128  }
  0x34   :  { %518 = vsyncadd [#allocation3], 4294967168 }
  0x35   :  { %519 = dma.done.wait [#allocation6], 4096  }
  0x36   :  { %520 = vsyncadd [#allocation6], 4294963200  ;;  %v528_v0 = vmov 0.0|0.0   ;;  %vm529_vm0 = vmmov 0   ;;  %v530_v1 = vmov 0.0   ;;  %v61_v2 = vld [vmem:[#allocation5] sm:$0xff] }
  0x37   :  { %372 = vmatprep.subr.bf16.mxu0 %v528_v0  ;;  %334 = vmatprep.mubr.msk.f32.mxu0 %vm529_vm0, %v530_v1  ;;  %v62_v3 = vld [vmem:[#allocation5 + $0x8] sm:$0xff]  ;;  %v63_v4 = vld [vmem:[#allocation5 + $0x10] sm:$0xff]  ;;  %v64_v6 = vld [vmem:[#allocation5 + $0x18] sm:$0xff]  ;;  %s531_s7 = smov [#allocation8]  }
  0x38   :  { %396 = vmatprep.subr.bf16.mxu1 %v528_v0  ;;  %369 = vmatprep.mubr.msk.f32.mxu1 %vm529_vm0, %v530_v1  ;;  %v373_v5 = vpack.c.bf16 %v62_v3, %v61_v2  ;;  %v376_v7 = vpack.c.bf16 %v64_v6, %v63_v4  ;;  %v65_v8 = vld [vmem:[#allocation5 + $0x20] sm:$0xff]  ;;  %v66_v9 = vld [vmem:[#allocation5 + $0x28] sm:$0xff]  ;;  %v157_v12 = vld [vmem:[#allocation7 + $0x10] sm:$0xff]  ;;  %s256_s8 = sshll.u32 %s531_s7, 4  ;;  %s257_s8 = int_to_ptr.vmem [resolvable:$true] %s256_s8 }
  0x39   :  { %v155_v10 = vld [vmem:[#allocation7] sm:$0xff]  ;;  %v156_v11 = vld [vmem:[#allocation7 + $0x8] sm:$0xff]  ;;  %v158_v13 = vld [vmem:[#allocation7 + $0x18] sm:$0xff]  ;;  %v379_v14 = vpack.c.bf16 %v66_v9, %v65_v8  ;;  %s495_s9 = scalar_lea.vmem %s257_s8, 128  ;;  %p500_p11 = scmp.lt.s32.totalorder %s257_s8, %s257_s8 }
  0x3a   :  { %374 = vmatpush3.bf16.msra.mxu0 %v373_v5  ;;  %v397_v15 = vpack.c.bf16 %v156_v11, %v155_v10  ;;  %v67_v16 = vld [vmem:[#allocation5 + $0x30] sm:$0xff]  ;;  %v68_v17 = vld [vmem:[#allocation5 + $0x38] sm:$0xff]  ;;  %v400_v18 = vpack.c.bf16 %v158_v13, %v157_v12  ;;  %v159_v19 = vld [vmem:[#allocation7 + $0x20] sm:$0xff]  ;;  %p496_p10 = scmp.ne.s32.totalorder %s257_s8, %s495_s9  ;;  %p501_p12 = scmp.lt.s32.totalorder %s495_s9, %s495_s9 }
  0x3b   :  { %375 = vmatprep.subr.bf16.mxu0 %v528_v0  ;;  %v160_v20 = vld [vmem:[#allocation7 + $0x28] sm:$0xff]  ;;  %v382_v21 = vpack.c.bf16 %v68_v17, %v67_v16  ;;  %v69_v22 = vld [vmem:[#allocation5 + $0x40] sm:$0xff]  ;;  %v161_v25 = vld [vmem:[#allocation7 + $0x30] sm:$0xff] }
  0x3c   :  { %398 = vmatpush3.bf16.msra.mxu1 %v397_v15  ;;  %v70_v23 = vld [vmem:[#allocation5 + $0x48] sm:$0xff]  ;;  %v403_v24 = vpack.c.bf16 %v160_v20, %v159_v19  ;;  %v162_v26 = vld [vmem:[#allocation7 + $0x38] sm:$0xff]  ;;  %v71_v28 = vld [vmem:[#allocation5 + $0x50] sm:$0xff]  ;;  %p502_p13 = por %p501_p12, %p500_p11 }
  0x3d   :  { %399 = vmatprep.subr.bf16.mxu1 %v528_v0  ;;  %v385_v27 = vpack.c.bf16 %v70_v23, %v69_v22  ;;  %v72_v29 = vld [vmem:[#allocation5 + $0x58] sm:$0xff]  ;;  %v406_v30 = vpack.c.bf16 %v162_v26, %v161_v25  ;;  %v163_v31 = vld [vmem:[#allocation7 + $0x40] sm:$0xff]  ;;  %v164_v32 = vld [vmem:[#allocation7 + $0x48] sm:$0xff] }
  0x3e   :  { %377 = vmatpush3.bf16.msra.mxu0 %v376_v7  ;;  %v388_v33 = vpack.c.bf16 %v72_v29, %v71_v28  ;;  %v73_v34 = vld [vmem:[#allocation5 + $0x60] sm:$0xff]  ;;  %v74_v35 = vld [vmem:[#allocation5 + $0x68] sm:$0xff]  ;;  %v409_v36 = vpack.c.bf16 %v164_v32, %v163_v31  ;;  %v165_v37 = vld [vmem:[#allocation7 + $0x50] sm:$0xff]  ;;  %p503_p0 = pnand %p502_p13, %p496_p10 }
  0x3f   :  { %378 = vmatprep.subr.bf16.mxu0 %v528_v0  ;;  %v166_v38 = vld [vmem:[#allocation7 + $0x58] sm:$0xff]  ;;  %v391_v39 = vpack.c.bf16 %v74_v35, %v73_v34  ;;  %v75_v40 = vld [vmem:[#allocation5 + $0x70] sm:$0xff]  ;;  %v167_v43 = vld [vmem:[#allocation7 + $0x60] sm:$0xff] }
  0x40   :  { %401 = vmatpush3.bf16.msra.mxu1 %v400_v18  ;;  %v76_v41 = vld [vmem:[#allocation5 + $0x78] sm:$0xff]  ;;  %v412_v42 = vpack.c.bf16 %v166_v38, %v165_v37  ;;  %v168_v44 = vld [vmem:[#allocation7 + $0x68] sm:$0xff]  ;;  %v169_v48 = vld [vmem:[#allocation7 + $0x70] sm:$0xff] }
  0x41   :  { %402 = vmatprep.subr.bf16.mxu1 %v528_v0  ;;  %v394_v45 = vpack.c.bf16 %v76_v41, %v75_v40  ;;  %v415_v46 = vpack.c.bf16 %v168_v44, %v167_v43  ;;  %v60_v47 = vld [vmem:[#allocation2] sm:$0xff] }
  0x42   :  { %380 = vmatpush3.bf16.msra.mxu0 %v379_v14  ;;  %v170_v49 = vld [vmem:[#allocation7 + $0x78] sm:$0xff] }
  0x43   :  { %381 = vmatprep.subr.bf16.mxu0 %v528_v0  ;;  %v418_v50 = vpack.c.bf16 %v170_v49, %v169_v48  ;;  %v266_v51 = vld [vmem:[%s640_s2] ss:$0 sm:$0xff] }
  0x44   :  { %404 = vmatpush3.bf16.msra.mxu1 %v403_v24  ;;  %v267_v56 = vld [vmem:[%s642_s4] ss:$0 sm:$0xff] }
  0x45   :  { %405 = vmatprep.subr.bf16.mxu1 %v528_v0 }
  0x46   :  { %383 = vmatpush3.bf16.msra.mxu0 %v382_v21 }
  0x47   :  { %384 = vmatprep.subr.bf16.mxu0 %v528_v0 }
  0x48   :  { %407 = vmatpush3.bf16.msra.mxu1 %v406_v30 }
  0x49   :  { %408 = vmatprep.subr.bf16.mxu1 %v528_v0 }
  0x4a   :  { %386 = vmatpush3.bf16.msra.mxu0 %v385_v27 }
  0x4b   :  { %387 = vmatprep.subr.bf16.mxu0 %v528_v0 }
  0x4c   :  { %410 = vmatpush3.bf16.msra.mxu1 %v409_v36 }
  0x4d   :  { %411 = vmatprep.subr.bf16.mxu1 %v528_v0 }
  0x4e   :  { %389 = vmatpush3.bf16.msra.mxu0 %v388_v33 }
  0x4f   :  { %390 = vmatprep.subr.bf16.mxu0 %v528_v0 }
  0x50   :  { %413 = vmatpush3.bf16.msra.mxu1 %v412_v42 }
  0x51   :  { %414 = vmatprep.subr.bf16.mxu1 %v528_v0 }
  0x52   :  { %392 = vmatpush3.bf16.msra.mxu0 %v391_v39 }
  0x53   :  { %393 = vmatprep.subr.bf16.mxu0 %v528_v0 }
  0x54   :  { %416 = vmatpush3.bf16.msra.mxu1 %v415_v46 }
  0x55   :  { %417 = vmatprep.subr.bf16.mxu1 %v528_v0 }
  0x56   :  { %395 = vmatpush3.bf16.msra.mxu0 %v394_v45 }
  0x58   :  { %419 = vmatpush3.bf16.msra.mxu1 %v418_v50 }
  0x59   :  { %335 = vmatmul.mubr.f32.vlgmr.msra.gmra.mrb[0].mxu0 %v60_v47 }
 0x12c   :  { %v150_v52 = vpop.f32.mrb[0].mxu0 }
 0x12d   :  { %v151_v53 = vadd.f32 %v266_v51, %v150_v52  ;;  %v336_v54 = vpop.f32.mrb[1].mxu0 }
 0x12f   :  { %v154_v55 = vmax.f32 %v151_v53, 0.0 }
 0x131   :  { %370 = vmatmul.mubr.f32.vlgmr.msra.gmra.mrb[0].mxu1 %v154_v55 }
 0x204   :  { %v244_v57 = vpop.f32.mrb[0].mxu1 }
 0x205   :  { %v245_v58 = vadd.f32 %v267_v56, %v244_v57  ;;  %v371_v59 = vpop.f32.mrb[1].mxu1 }
 0x207   :  { %v248_v60 = vmax.f32 %v245_v58, 0.0 }
 0x209   :  { %249 = vst [vmem:[#allocation8] sm:$0xff] %v248_v60 }
 0x20a   :  { %506 = shalt.err (!%p503_p0)
}
 0x20b   :  { %s507_s11 = scalar_lea.hbm %s643_s5, 128 }
 0x20c   :  { %p508_p1 = scmp.ne.s32.totalorder %s643_s5, %s507_s11  ;;  %p511_p2 = scmp.lt.u32.totalorder %s507_s11, %s643_s5 }
 0x20e   :  { %p513_p3 = pnand %p511_p2, %p508_p1 }
 0x210   :  { %516 = shalt.err (!%p513_p3)
}
 0x211   :  { %259 = dma.vmem_to_hbm [thread:$0]  %s257_s8, 128, %s643_s5, [#allocation4]  }
 0x212   :  { %521 = dma.done.wait [#allocation4], 128  }
 0x213   :  { %522 = vsyncadd [#allocation4], 4294967168 }
 0x214   :  { %263 = vsyncpa [#allocation3], 1 }
 0x215   :  { %264 = vsyncpa [#allocation6], 1 }
 0x216   :  { %265 = vsyncpa [#allocation4], 1 }

</bundles_post_ra>
